<compile_context>
chip_gen: v7x
topology: tpu7x:2x2x1
jax: 0.10.0
libtpu: 0.0.40
codegen_flags: <defaults>
</compile_context>

<pallas_src>
import functools

import jax
import jax.numpy as jnp
from jax.experimental import pallas as pl
from jax.experimental.pallas import tpu as pltpu

CONTEXT_SIZE = 2
NEG_BIG = -1e30  # finite "-inf" used for masking and running-max init


def _round_up(x, m):
    return (x + m - 1) // m * m


def cbow_kernel(e_ref, w1_ref, b1_ref, w2_ref, b2_ref, o_ref,
                h_sc, m_sc, l_sc, *, vocab_size, tv):
    p = pl.program_id(1)   # 0 = accumulate softmax stats, 1 = write output
    v = pl.program_id(2)   # vocab tile index

    # Hidden layer + softmax-stat init: once per batch tile.
    @pl.when(jnp.logical_and(p == 0, v == 0))
    def _init():
        h = jnp.dot(e_ref[...], w1_ref[...], preferred_element_type=jnp.float32)
        h_sc[...] = jnp.maximum(h + b1_ref[...], 0.0)
        m_sc[...] = jnp.full(m_sc.shape, NEG_BIG, jnp.float32)
        l_sc[...] = jnp.zeros(l_sc.shape, jnp.float32)

    # Logits for this vocab tile (bf16 MXU inputs, f32 accumulation).
    logits = jnp.dot(h_sc[...].astype(jnp.bfloat16), w2_ref[...],
                     preferred_element_type=jnp.float32) + b2_ref[...]
    # Mask vocab-padding columns so they cannot affect the normalizer.
    col = jax.lax.broadcasted_iota(jnp.int32, logits.shape, 1) + v * tv
    logits = jnp.where(col < vocab_size, logits, NEG_BIG)

    @pl.when(p == 0)
    def _accumulate():
        m_new = jnp.maximum(m_sc[...], jnp.max(logits, axis=-1, keepdims=True))
        l_sc[...] = (jnp.exp(m_sc[...] - m_new) * l_sc[...]
                     + jnp.sum(jnp.exp(logits - m_new), axis=-1, keepdims=True))
        m_sc[...] = m_new

    @pl.when(p == 1)
    def _write():
        lse = m_sc[...] + jnp.log(l_sc[...])
        o_ref[...] = logits - lse


def cbow_forward(x_ids, embed_table, w1, b1, w2, b2):
    """x_ids: [B, 2*CONTEXT_SIZE] int32; returns [B, vocab] f32 log-probs."""
    B = x_ids.shape[0]
    embed_size = embed_table.shape[1]
    K = 2 * CONTEXT_SIZE * embed_size
    H = w1.shape[1]
    V = w2.shape[1]

    Kp = _round_up(K, 128)                       # fill MXU K dimension
    Vp = _round_up(V, 128)                       # lane-dense output
    TB = 256 if B >= 256 else _round_up(B, 8)    # batch tile (parallel axis)
    Bp = _round_up(B, TB)
    TV = next(c for c in (2048, 1024, 512, 256, 128) if Vp % c == 0)

    # Embedding gather + flatten (XLA glue outside the kernel).
    # TODO(synk): fuse the gather into the kernel with PrefetchScalarGridSpec +
    # pl.Element row-gather on embed_table instead of materializing it in HBM.
    embeds = jnp.take(embed_table, x_ids, axis=0).reshape(B, K)

    # Pad and cast MXU inputs to bf16; biases stay f32.
    e_p = jnp.zeros((Bp, Kp), jnp.bfloat16).at[:B, :K].set(embeds.astype(jnp.bfloat16))
    w1_p = jnp.zeros((Kp, H), jnp.bfloat16).at[:K, :].set(w1.astype(jnp.bfloat16))
    b1_p = b1.reshape(1, H).astype(jnp.float32)
    w2_p = jnp.zeros((H, Vp), jnp.bfloat16).at[:, :V].set(w2.astype(jnp.bfloat16))
    b2_p = jnp.zeros((1, Vp), jnp.float32).at[:, :V].set(b2.reshape(1, V).astype(jnp.float32))

    n_btiles, n_vtiles = Bp // TB, Vp // TV
    grid = (n_btiles, 2, n_vtiles)

    # Rough cost hint for the XLA scheduler.
    cost = pl.CostEstimate(
        flops=2 * Bp * Kp * H + 4 * Bp * H * Vp,
        transcendentals=Bp * Vp + 2 * Bp * n_vtiles,
        bytes_accessed=int(e_p.size * 2 + w1_p.size * 2 + b1_p.size * 4
                           + 2 * n_btiles * (w2_p.size * 2 + b2_p.size * 4)
                           + Bp * Vp * 4),
    )

    # Explicit VMEM budget: double-buffered streaming tiles + resident blocks.
    vmem_bytes = (2 * (TB * Kp * 2 + Kp * H * 2 + H * 4
                       + H * TV * 2 + TV * 4 + TB * TV * 4)
                  + TB * H * 4 + 2 * TB * 128 * 4)
    vmem_limit = int(min(max(2 * vmem_bytes, 16 * 1024 * 1024), 64 * 1024 * 1024))

    out = pl.pallas_call(
        functools.partial(cbow_kernel, vocab_size=V, tv=TV),
        out_shape=jax.ShapeDtypeStruct((Bp, Vp), jnp.float32),
        grid=grid,
        in_specs=[
            pl.BlockSpec((TB, Kp), lambda b, p, v: (b, 0)),  # embeds: resident per batch tile
            pl.BlockSpec((Kp, H), lambda b, p, v: (0, 0)),   # W1: resident
            pl.BlockSpec((1, H), lambda b, p, v: (0, 0)),    # b1: resident
            pl.BlockSpec((H, TV), lambda b, p, v: (0, v)),   # W2: streamed vocab tiles
            pl.BlockSpec((1, TV), lambda b, p, v: (0, v)),   # b2: streamed vocab tiles
        ],
        # Pass 0 parks on out block (b, 0) without writing it (no garbage
        # writeback); pass 1 writes each (b, v) output block exactly once.
        out_specs=pl.BlockSpec((TB, TV), lambda b, p, v: (b, v * p)),
        scratch_shapes=[
            pltpu.VMEM((TB, H), jnp.float32),  # hidden activations
            pltpu.VMEM((TB, 1), jnp.float32),  # running max
            pltpu.VMEM((TB, 1), jnp.float32),  # running sum of exp
        ],
        compiler_params=pltpu.CompilerParams(
            dimension_semantics=("parallel", "arbitrary", "arbitrary"),
            vmem_limit_bytes=vmem_limit,
        ),
        cost_estimate=cost,
    )(e_p, w1_p, b1_p, w2_p, b2_p)

    return out[:B, :V]


def init_params(key, vocab_size, embed_size):
    """Deterministic parameter init (mimics PyTorch default init scales)."""
    k_emb, k_w1, k_b1, k_w2, k_b2 = jax.random.split(key, 5)
    in1 = 2 * CONTEXT_SIZE * embed_size
    embed_table = jax.random.normal(k_emb, (vocab_size, embed_size), jnp.float32)
    lim1 = 1.0 / jnp.sqrt(in1)
    w1 = jax.random.uniform(k_w1, (in1, 128), jnp.float32, -lim1, lim1)
    b1 = jax.random.uniform(k_b1, (1, 128), jnp.float32, -lim1, lim1)
    lim2 = 1.0 / jnp.sqrt(128.0)
    w2 = jax.random.uniform(k_w2, (128, vocab_size), jnp.float32, -lim2, lim2)
    b2 = jax.random.uniform(k_b2, (1, vocab_size), jnp.float32, -lim2, lim2)
    return embed_table, w1, b1, w2, b2


if __name__ == "__main__":
    vocab_size = 300   # pads to 384 -> 3 vocab tiles of 128 (exercises online softmax)
    embed_size = 16
    batch = 12         # pads to 16 rows (exercises batch padding)

    key = jax.random.PRNGKey(0)
    k_params, k_x = jax.random.split(key)
    embed_table, w1, b1, w2, b2 = init_params(k_params, vocab_size, embed_size)

    # Context-word indices: [batch, 2*CONTEXT_SIZE]
    x = jax.random.randint(k_x, (batch, 2 * CONTEXT_SIZE), 0, vocab_size, jnp.int32)

    log_probs = jax.block_until_ready(cbow_forward(x, embed_table, w1, b1, w2, b2))
    assert log_probs.shape == (batch, vocab_size)

    # Reference 1: same bf16-matmul / f32-accumulate recipe as the kernel (tight).
    embeds_ref = jnp.take(embed_table, x, axis=0).reshape(batch, -1)
    h_bf = jnp.maximum(
        jnp.dot(embeds_ref.astype(jnp.bfloat16), w1.astype(jnp.bfloat16),
                preferred_element_type=jnp.float32) + b1, 0.0)
    logits_bf = jnp.dot(h_bf.astype(jnp.bfloat16), w2.astype(jnp.bfloat16),
                        preferred_element_type=jnp.float32) + b2
    ref_bf = jax.nn.log_softmax(logits_bf, axis=1)
    assert jnp.allclose(log_probs, ref_bf, atol=5e-3, rtol=0.0), \
        float(jnp.max(jnp.abs(log_probs - ref_bf)))

    # Reference 2: full-f32 PyTorch-equivalent forward (loose; bf16 weight error).
    h_f32 = jnp.maximum(embeds_ref @ w1 + b1, 0.0)
    ref_f32 = jax.nn.log_softmax(h_f32 @ w2 + b2, axis=1)
    assert jnp.allclose(log_probs, ref_f32, atol=5e-2, rtol=0.0), \
        float(jnp.max(jnp.abs(log_probs - ref_f32)))

    print("KERNEL_OK")
</pallas_src>

<mosaic_0001>
module attributes {stable_mosaic.version = 11 : i64} {
  func.func @cbow_kernel(%arg0: i32, %arg1: i32, %arg2: i32, %arg3: memref<16x128xbf16, #tpu.memory_space<vmem>>, %arg4: memref<128x128xbf16, #tpu.memory_space<vmem>>, %arg5: memref<1x128xf32, #tpu.memory_space<vmem>>, %arg6: memref<128x128xbf16, #tpu.memory_space<vmem>>, %arg7: memref<1x128xf32, #tpu.memory_space<vmem>>, %arg8: memref<16x128xf32, #tpu.memory_space<vmem>>, %arg9: memref<16x128xf32, #tpu.memory_space<vmem>>, %arg10: memref<16x1xf32, #tpu.memory_space<vmem>>, %arg11: memref<16x1xf32, #tpu.memory_space<vmem>>) attributes {dimension_semantics = [#tpu.dimension_semantics<parallel>, #tpu.dimension_semantics<arbitrary>, #tpu.dimension_semantics<arbitrary>], iteration_bounds = array<i64: 1, 2, 3>, scalar_prefetch = 0 : i64, scratch_operands = 3 : i64, tpu.core_type = #tpu.core_type<tc>, window_params = [{transform_indices = @transform_0, window_bounds = array<i64: 16, 128>}, {pipeline_mode = #tpu.pipeline_mode<synchronous>, transform_indices = @transform_1, window_bounds = array<i64: 128, 128>}, {pipeline_mode = #tpu.pipeline_mode<synchronous>, transform_indices = @transform_2, window_bounds = array<i64: 1, 128>}, {transform_indices = @transform_3, window_bounds = array<i64: 128, 128>}, {transform_indices = @transform_4, window_bounds = array<i64: 1, 128>}, {transform_indices = @transform_5, window_bounds = array<i64: 16, 128>}]} {
    %c0_i32 = arith.constant 0 : i32
    %0 = arith.cmpi eq, %arg1, %c0_i32 : i32
    %c0_i32_0 = arith.constant 0 : i32
    %1 = arith.cmpi eq, %arg2, %c0_i32_0 : i32
    %2 = arith.andi %0, %1 : i1
    %3 = arith.extui %2 : i1 to i32
    %c0_i32_1 = arith.constant 0 : i32
    %4 = arith.cmpi ne, %3, %c0_i32_1 : i32
    scf.if %4 {
      %c0_11 = arith.constant 0 : index
      %c0_12 = arith.constant 0 : index
      %26 = vector.load %arg3[%c0_11, %c0_12] : memref<16x128xbf16, #tpu.memory_space<vmem>>, vector<16x128xbf16>
      %c0_13 = arith.constant 0 : index
      %c0_14 = arith.constant 0 : index
      %27 = vector.load %arg4[%c0_13, %c0_14] : memref<128x128xbf16, #tpu.memory_space<vmem>>, vector<128x128xbf16>
      %cst_15 = arith.constant dense<0.000000e+00> : vector<16x128xf32>
      %28 = tpu.matmul %26, %27, %cst_15 {dimension_numbers = #tpu.dot_dimension_numbers<[1], [0], [0], [1], [0, 0, 1, 1], [], []>} : vector<16x128xbf16>, vector<128x128xbf16>, vector<16x128xf32> -> vector<16x128xf32>
      %c0_16 = arith.constant 0 : index
      %c0_17 = arith.constant 0 : index
      %29 = vector.load %arg5[%c0_16, %c0_17] : memref<1x128xf32, #tpu.memory_space<vmem>>, vector<1x128xf32>
      %30 = vector.broadcast %29 : vector<1x128xf32> to vector<16x128xf32>
      %31 = arith.addf %28, %30 : vector<16x128xf32>
      %cst_18 = arith.constant 0.000000e+00 : f32
      %32 = vector.broadcast %cst_18 : f32 to vector<16x128xf32>
      %33 = arith.maximumf %31, %32 : vector<16x128xf32>
      %c0_19 = arith.constant 0 : index
      %c0_20 = arith.constant 0 : index
      %34 = vector.load %arg9[%c0_19, %c0_20] : memref<16x128xf32, #tpu.memory_space<vmem>>, vector<16x128xf32>
      tpu.vector_store %arg9[%c0_19, %c0_20], %33 {strides = array<i32>} : memref<16x128xf32, #tpu.memory_space<vmem>>, vector<16x128xf32>,
      %cst_21 = arith.constant -1.000000e+30 : f32
      %35 = vector.broadcast %cst_21 : f32 to vector<16x1xf32>
      %c0_22 = arith.constant 0 : index
      %c0_23 = arith.constant 0 : index
      %36 = vector.load %arg10[%c0_22, %c0_23] : memref<16x1xf32, #tpu.memory_space<vmem>>, vector<16x1xf32>
      tpu.vector_store %arg10[%c0_22, %c0_23], %35 {strides = array<i32>} : memref<16x1xf32, #tpu.memory_space<vmem>>, vector<16x1xf32>,
      %cst_24 = arith.constant 0.000000e+00 : f32
      %37 = vector.broadcast %cst_24 : f32 to vector<16x1xf32>
      %c0_25 = arith.constant 0 : index
      %c0_26 = arith.constant 0 : index
      %38 = vector.load %arg11[%c0_25, %c0_26] : memref<16x1xf32, #tpu.memory_space<vmem>>, vector<16x1xf32>
      tpu.vector_store %arg11[%c0_25, %c0_26], %37 {strides = array<i32>} : memref<16x1xf32, #tpu.memory_space<vmem>>, vector<16x1xf32>,
    } else {
    }
    %c0 = arith.constant 0 : index
    %c0_2 = arith.constant 0 : index
    %5 = vector.load %arg9[%c0, %c0_2] : memref<16x128xf32, #tpu.memory_space<vmem>>, vector<16x128xf32>
    %6 = arith.truncf %5 : vector<16x128xf32> to vector<16x128xbf16>
    %c0_3 = arith.constant 0 : index
    %c0_4 = arith.constant 0 : index
    %7 = vector.load %arg6[%c0_3, %c0_4] : memref<128x128xbf16, #tpu.memory_space<vmem>>, vector<128x128xbf16>
    %cst = arith.constant dense<0.000000e+00> : vector<16x128xf32>
    %8 = tpu.matmul %6, %7, %cst {dimension_numbers = #tpu.dot_dimension_numbers<[1], [0], [0], [1], [0, 0, 1, 1], [], []>} : vector<16x128xbf16>, vector<128x128xbf16>, vector<16x128xf32> -> vector<16x128xf32>
    %c0_5 = arith.constant 0 : index
    %c0_6 = arith.constant 0 : index
    %9 = vector.load %arg7[%c0_5, %c0_6] : memref<1x128xf32, #tpu.memory_space<vmem>>, vector<1x128xf32>
    %10 = vector.broadcast %9 : vector<1x128xf32> to vector<16x128xf32>
    %11 = arith.addf %8, %10 : vector<16x128xf32>
    %12 = tpu.iota {dimensions = array<i32: 1>} : vector<16x128xi32>
    %c128_i32 = arith.constant 128 : i32
    %13 = arith.muli %arg2, %c128_i32 : i32
    %14 = vector.broadcast %13 : i32 to vector<16x128xi32>
    %15 = arith.addi %12, %14 : vector<16x128xi32>
    %c300_i32 = arith.constant 300 : i32
    %16 = vector.broadcast %c300_i32 : i32 to vector<16x128xi32>
    %17 = arith.cmpi slt, %15, %16 : vector<16x128xi32>
    %cst_7 = arith.constant -1.000000e+30 : f32
    %18 = vector.broadcast %cst_7 : f32 to vector<16x128xf32>
    %19 = arith.select %17, %11, %18 : vector<16x128xi1>, vector<16x128xf32>
    %c0_i32_8 = arith.constant 0 : i32
    %20 = arith.cmpi eq, %arg1, %c0_i32_8 : i32
    %21 = arith.extui %20 : i1 to i32
    %c0_i32_9 = arith.constant 0 : i32
    %22 = arith.cmpi ne, %21, %c0_i32_9 : i32
    scf.if %22 {
      %c0_11 = arith.constant 0 : index
      %c0_12 = arith.constant 0 : index
      %26 = vector.load %arg10[%c0_11, %c0_12] : memref<16x1xf32, #tpu.memory_space<vmem>>, vector<16x1xf32>
      %cst_13 = arith.constant dense<0xFF800000> : vector<16xf32>
      %27 = vector.multi_reduction <maximumf>, %19, %cst_13 [1] : vector<16x128xf32> to vector<16xf32>
      %28 = vector.shape_cast %27 : vector<16xf32> to vector<16x1xf32>
      %29 = arith.maximumf %26, %28 : vector<16x1xf32>
      %c0_14 = arith.constant 0 : index
      %c0_15 = arith.constant 0 : index
      %30 = vector.load %arg10[%c0_14, %c0_15] : memref<16x1xf32, #tpu.memory_space<vmem>>, vector<16x1xf32>
      %31 = arith.subf %30, %29 : vector<16x1xf32>
      %32 = math.exp %31 : vector<16x1xf32>
      %c0_16 = arith.constant 0 : index
      %c0_17 = arith.constant 0 : index
      %33 = vector.load %arg11[%c0_16, %c0_17] : memref<16x1xf32, #tpu.memory_space<vmem>>, vector<16x1xf32>
      %34 = arith.mulf %32, %33 : vector<16x1xf32>
      %35 = vector.broadcast %29 : vector<16x1xf32> to vector<16x128xf32>
      %36 = arith.subf %19, %35 : vector<16x128xf32>
      %37 = math.exp %36 : vector<16x128xf32>
      %cst_18 = arith.constant dense<0.000000e+00> : vector<16xf32>
      %38 = vector.multi_reduction <add>, %37, %cst_18 [1] : vector<16x128xf32> to vector<16xf32>
      %39 = vector.shape_cast %38 : vector<16xf32> to vector<16x1xf32>
      %40 = arith.addf %34, %39 : vector<16x1xf32>
      %c0_19 = arith.constant 0 : index
      %c0_20 = arith.constant 0 : index
      %41 = vector.load %arg11[%c0_19, %c0_20] : memref<16x1xf32, #tpu.memory_space<vmem>>, vector<16x1xf32>
      tpu.vector_store %arg11[%c0_19, %c0_20], %40 {strides = array<i32>} : memref<16x1xf32, #tpu.memory_space<vmem>>, vector<16x1xf32>,
      %c0_21 = arith.constant 0 : index
      %c0_22 = arith.constant 0 : index
      %42 = vector.load %arg10[%c0_21, %c0_22] : memref<16x1xf32, #tpu.memory_space<vmem>>, vector<16x1xf32>
      tpu.vector_store %arg10[%c0_21, %c0_22], %29 {strides = array<i32>} : memref<16x1xf32, #tpu.memory_space<vmem>>, vector<16x1xf32>,
    } else {
    }
    %c1_i32 = arith.constant 1 : i32
    %23 = arith.cmpi eq, %arg1, %c1_i32 : i32
    %24 = arith.extui %23 : i1 to i32
    %c0_i32_10 = arith.constant 0 : i32
    %25 = arith.cmpi ne, %24, %c0_i32_10 : i32
    scf.if %25 {
      %c0_11 = arith.constant 0 : index
      %c0_12 = arith.constant 0 : index
      %26 = vector.load %arg10[%c0_11, %c0_12] : memref<16x1xf32, #tpu.memory_space<vmem>>, vector<16x1xf32>
      %c0_13 = arith.constant 0 : index
      %c0_14 = arith.constant 0 : index
      %27 = vector.load %arg11[%c0_13, %c0_14] : memref<16x1xf32, #tpu.memory_space<vmem>>, vector<16x1xf32>
      %28 = math.log %27 : vector<16x1xf32>
      %29 = arith.addf %26, %28 : vector<16x1xf32>
      %30 = vector.broadcast %29 : vector<16x1xf32> to vector<16x128xf32>
      %31 = arith.subf %19, %30 : vector<16x128xf32>
      %c0_15 = arith.constant 0 : index
      %c0_16 = arith.constant 0 : index
      %32 = vector.load %arg8[%c0_15, %c0_16] : memref<16x128xf32, #tpu.memory_space<vmem>>, vector<16x128xf32>
      tpu.vector_store %arg8[%c0_15, %c0_16], %31 {strides = array<i32>} : memref<16x128xf32, #tpu.memory_space<vmem>>, vector<16x128xf32>,
    } else {
    }
    return
  }
  func.func @transform_0(%arg0: i32, %arg1: i32, %arg2: i32) -> (i32, i32) {
    %c0_i32 = arith.constant 0 : i32
    %c0_i32_0 = arith.constant 0 : i32
    return %arg0, %c0_i32 : i32, i32
  }
  func.func @transform_1(%arg0: i32, %arg1: i32, %arg2: i32) -> (i32, i32) {
    %c0_i32 = arith.constant 0 : i32
    %c0_i32_0 = arith.constant 0 : i32
    %c0_i32_1 = arith.constant 0 : i32
    return %c0_i32, %c0_i32_0 : i32, i32
  }
  func.func @transform_2(%arg0: i32, %arg1: i32, %arg2: i32) -> (i32, i32) {
    %c0_i32 = arith.constant 0 : i32
    %c0_i32_0 = arith.constant 0 : i32
    %c0_i32_1 = arith.constant 0 : i32
    return %c0_i32, %c0_i32_0 : i32, i32
  }
  func.func @transform_3(%arg0: i32, %arg1: i32, %arg2: i32) -> (i32, i32) {
    %c0_i32 = arith.constant 0 : i32
    %c0_i32_0 = arith.constant 0 : i32
    return %c0_i32, %arg2 : i32, i32
  }
  func.func @transform_4(%arg0: i32, %arg1: i32, %arg2: i32) -> (i32, i32) {
    %c0_i32 = arith.constant 0 : i32
    %c0_i32_0 = arith.constant 0 : i32
    return %c0_i32, %arg2 : i32, i32
  }
  func.func @transform_5(%arg0: i32, %arg1: i32, %arg2: i32) -> (i32, i32) {
    %0 = arith.muli %arg2, %arg1 : i32
    %c0_i32 = arith.constant 0 : i32
    return %arg0, %0 : i32, i32
  }
}

</mosaic_0001>

<bundles_post_ra>
// kernel: tpu_custom_call.1
= control target key start
LH: loop header
LB: loop body
LE: loop exit
PB: predicated region body
PF: predicated region fallthrough
CT: control target
= control target key end

     0   :  { %s1692_s0 = inlined_call_operand.hbm [shape: bf16[16,128], index: 0, kind: input, shape index: {}]   ;;  %s1693_s1 = inlined_call_operand.hbm [shape: bf16[128,128], index: 1, kind: input, shape index: {}]   ;;  %s1694_s2 = inlined_call_operand.vmem [shape: f32[1,128], index: 2, kind: input, shape index: {}]   ;;  %s1695_s3 = inlined_call_operand.hbm [shape: bf16[128,384], index: 3, kind: input, shape index: {}]   ;;  %s1696_s4 = inlined_call_operand.vmem [shape: f32[1,384], index: 4, kind: input, shape index: {}]   ;;  %s1697_s5 = inlined_call_operand.hbm [shape: f32[16,384], index: 5, kind: output, shape index: {}]  }
   0x1   :  { %1710 = sst [smem:[#allocation21_spill]] %s1692_s0 }
   0x2   :  { %1711 = sst [smem:[#allocation22_spill]] %s1693_s1 }
   0x3   :  { %1712 = sst [smem:[#allocation23_spill]] %s1694_s2 }
   0x4   :  { %1713 = sst [smem:[#allocation24_spill]] %s1697_s5 }
   0x5   :  { %10 = vsyncpa [#allocation6], 0 }
   0x6   :  { %11 = vsyncpa [#allocation9], 0 }
   0x7   :  { %12 = vsyncpa [#allocation7], 0 }
   0x8   :  { %14 = vsyncpa [#allocation7 + $0x1], 0  ;;  %s1318_s18 = smov 0   ;;  %s1320_s19 = smov 0  }
   0x9   :  { %s1322_s20 = smov 0   ;;  %s1324_s21 = smov 0  }
   0xa   :  { %s1326_s22 = smov 0   ;;  %s1328_s23 = smov 0  }
   0xb   :  { %s1330_s24 = smov 0   ;;  %s1332_s25 = smov 0  }
   0xc   :  { %s1334_s26 = smov 0   ;;  %s1336_s27 = smov 0  }
   0xd   :  { %s1338_s28 = smov 0  }
   0xe LB: > { %1714 = sst [smem:[#allocation16_spill]] %s1229_s18  ;;  %s1372_s29 = sadd.s32 4294967295, %s1269_s28   ;;  %s1269_s28 = sphi %s1338_s28, %s20_s28   ;;  %s1265_s27 = sphi %s1336_s27, %s1745_s27   ;;  %s1261_s26 = sphi %s1334_s26, %s1753_s26   ;;  %s1257_s25 = sphi %s1332_s25, %s1744_s25   ;;  %s1253_s24 = sphi %s1330_s24, %s1752_s24   ;;  %s1249_s23 = sphi %s1328_s23, %s1751_s23   ;;  %s1245_s22 = sphi %s1326_s22, %s1750_s22   ;;  %s1241_s21 = sphi %s1324_s21, %s1749_s21   ;;  %s1237_s20 = sphi %s1322_s20, %s1748_s20   ;;  %s1233_s19 = sphi %s1320_s19, %s1747_s19   ;;  %s1229_s18 = sphi %s1318_s18, %s1746_s18  }
   0xf   : > { %1715 = sst [smem:[#allocation17_spill]] %s1265_s27  ;;  %s789_s30 = sadd.s32 4294967294, %s1269_s28  }
  0x10   : > { %p121_p0 = scmp.ne.s32.totalorder %s1249_s23, %s1245_s22  ;;  %p122_p1 = scmp.eq.s32.totalorder %s1269_s28, 0 }
  0x11   : > { %p127_p2 = scmp.ne.s32.totalorder %s1245_s22, %s1241_s21  ;;  %p1700_p3 = scmp.eq.s32.totalorder %s1372_s29, 0 }
  0x12   : > { %p1382_p4 = por %p122_p1, %p121_p0  ;;  %p180_p5 = scmp.ne.s32.totalorder %s1237_s20, %s1233_s19 }
  0x13   : > { %p1390_p6 = por %p1700_p3, %p127_p2  ;;  %p181_p7 = scmp.eq.s32.totalorder %s1372_s29, 5 }
  0x14   : > { %p186_p8 = scmp.ne.s32.totalorder %s1233_s19, %s1229_s18  ;;  %p187_p9 = scmp.eq.s32.totalorder %s789_s30, 5 }
  0x15   : > { %s1717_s9 = scalar_select %p1390_p6, 1, 0 }
  0x16   : > { %p1397_p10 = por %p181_p7, %p180_p5  ;;  %p790_p11 = scmp.ge.s32.totalorder %s1269_s28, 1 }
  0x17   : > { %p1402_p12 = por %p187_p9, %p186_p8  ;;  %p194_p13 = scmp.lt.s32.totalorder %s1269_s28, 7 }
  0x18   : > { %s1718_s10 = scalar_select %p1397_p10, 1, 0 }
  0x19   : > { %s1720_s11 = scalar_select %p1402_p12, 1, 0 }
  0x1a   : > { %1719 = sst [smem:[#allocation18_spill]] %s1718_s10  ;;  %p1407_p0 = pnand %p790_p11, %p194_p13 }
  0x1b   : > { %1721 = sst [smem:[#allocation19_spill]] %s1720_s11  ;;  %s1271_s13 = smov [#allocation5]  }
  0x1c   : > { %s209_s14 = sshll.u32 %s1271_s13, 4  ;;  %p897_p1 = pneg %p1407_p0  ;;  %s1411_s14 = int_to_ptr.vmem [resolvable:$true] %s209_s14 }
  0x1d   : > { %p914_p2 = scmp.lt.s32.totalorder %s1269_s28, 6  ;;  %s1272_s17 = smov [#allocation8]  }
  0x1e   : > { %p1418_p5 = pnand %p897_p1, %p1700_p3  ;;  %s222_s21 = sshll.u32 %s1272_s17, 4  ;;  %s1428_s21 = int_to_ptr.vmem [resolvable:$true] %s222_s21 }
  0x1f   : > { %p1424_p7 = pnand %p914_p2, %p1382_p4  ;;  %s1725_s0 = sld [smem:[#allocation21_spill]] }
  0x20   : > { %p1055_p9 = pneg %p1418_p5 }
  0x25   : > { %s1053_s7 = scalar_lea.hbm %s1725_s0, 128 }
  0x26   : > { %p1054_p8 = scmp.ne.s32.totalorder %s1725_s0, %s1053_s7  ;;  %p1060_p13 = scmp.lt.u32.totalorder %s1053_s7, %s1725_s0 }
  0x28   : > { %p1056_p4 = pnand %p1055_p9, %p1054_p8 }
  0x2a   : > { %p1057_p11 = pneg %p1056_p4 }
  0x2c   : > { %p1062_p1 = pnand %p1060_p13, %p1057_p11 }
  0x2e   : > { %1065 = shalt.err (!%p1062_p1)
}
  0x2f   : > { %s1066_s17 = scalar_lea.vmem %s1411_s14, 128  ;;  %p1074_p10 = scmp.lt.s32.totalorder %s1411_s14, %s1411_s14 }
  0x30   : > { %p1067_p2 = scmp.ne.s32.totalorder %s1411_s14, %s1066_s17  ;;  %p1075_p8 = scmp.lt.s32.totalorder %s1066_s17, %s1066_s17 }
  0x32   : > { %p1069_p3 = pnand %p1067_p2, %p1055_p9  ;;  %p1076_p4 = por %p1075_p8, %p1074_p10 }
  0x34   : > { %p1070_p12 = pneg %p1069_p3 }
  0x36   : > { %p1077_p6 = pnand %p1076_p4, %p1070_p12 }
  0x38   : > { %1080 = shalt.err (!%p1077_p6)
}
  0x39   : > { %s1706_s18 = smov 64   ;;  %s1707_s6 = smov 4  }
  0x3a   : > { %900 = dma.hbm_to_vmem [thread:$0]  (!%p1418_p5), %s1725_s0, 128, %s1411_s14, [#allocation6], %s1706_s18, %s1706_s18, %s1707_s6  }
  0x3b   : > { %s1726_s1 = sld [smem:[#allocation22_spill]] }
  0x41   : > { %s1081_s8 = scalar_lea.hbm %s1726_s1, 1024 }
  0x42   : > { %p1082_p3 = scmp.ne.s32.totalorder %s1726_s1, %s1081_s8  ;;  %p1088_p12 = scmp.lt.u32.totalorder %s1081_s8, %s1726_s1 }
  0x44   : > { %p1084_p6 = pnand %p1082_p3, %p1055_p9 }
  0x46   : > { %p1085_p10 = pneg %p1084_p6 }
  0x48   : > { %p1090_p11 = pnand %p1088_p12, %p1085_p10 }
  0x4a   : > { %1093 = shalt.err (!%p1090_p11)
}
  0x4b   : > { %s1094_s14 = scalar_lea.vmem %s1428_s21, 1024  ;;  %p1102_p8 = scmp.lt.s32.totalorder %s1428_s21, %s1428_s21 }
  0x4c   : > { %p1095_p13 = scmp.ne.s32.totalorder %s1428_s21, %s1094_s14  ;;  %p1103_p4 = scmp.lt.s32.totalorder %s1094_s14, %s1094_s14 }
  0x4e   : > { %p1097_p1 = pnand %p1095_p13, %p1055_p9  ;;  %p1104_p3 = por %p1103_p4, %p1102_p8 }
  0x50   : > { %p1098_p2 = pneg %p1097_p1 }
  0x52   : > { %p1105_p6 = pnand %p1104_p3, %p1098_p2 }
  0x54   : > { %1108 = shalt.err (!%p1105_p6)
}
  0x55   : > { %903 = dma.hbm_to_vmem [thread:$0]  (!%p1418_p5), %s1726_s1, 1024, %s1428_s21, [#allocation9], %s1706_s18, %s1706_s18, %s1707_s6  }
  0x56   : > { %s32_s10 = sadd.s32 1, %s1261_s26  ;;  %s35_s15 = sadd.s32 1, %s1265_s27 }
  0x57   : > { %p33_p9 = scmp.ge.s32.totalorder %s32_s10, 3  ;;  %s163_s7 = smul.u32 %s1261_s26, %s1265_s27 }
  0x58   : > { %s239_s11 = sand.u32 1, %s1269_s28   ;;  %s241_s13 = sand.u32 1, %s1249_s23  }
  0x59   : > { %s1755_s10 = smov (%p33_p9, %s32_s10), 0  ;;  %s1757_s15 = smov (!%p33_p9, %s35_s15), %s1265_s27 }
  0x5a   : > { %s111_s30 = ssub.s32 %s1261_s26, %s1755_s10  ;;  %p37_p10 = scmp.ge.s32.totalorder %s1757_s15, 2 }
  0x5b   : > { %p112_p12 = scmp.eq.s32.totalorder %s111_s30, 0  ;;  %s795_s8 = sshll.u32 %s1261_s26, 6 }
  0x5c   : > { %s1759_s15 = smov (%p37_p10, %s1757_s15), 0  ;;  %s1728_s21 = sadd.s32 1, %s1249_s23 }
  0x5d   : > { %1727 = sst [smem:[#allocation20_spill]] %s1759_s15  ;;  %s164_s14 = smul.u32 %s1759_s15, %s1755_s10 }
  0x5e   : > { %s1505_s17 = scalar_select %p112_p12, %s1249_s23, %s1728_s21  }
  0x5f   : > { %s794_s2 = sshll.u32 %s241_s13, 6  ;;  %s1512_s6 = scalar_lea.hbm %s1695_s3, %s795_s8 }
  0x60   : > { %s166_s30 = ssub.s32 %s163_s7, %s164_s14  ;;  %s243_s0 = scalar_lea.vmem [#allocation10], %s794_s2 }
  0x61   : > { %s249_s1 = sshll.u32 %s243_s0, 4  ;;  %p168_p5 = scmp.eq.s32.totalorder %s166_s30, 0  ;;  %s1514_s1 = int_to_ptr.vmem [resolvable:$true] %s249_s1 }
  0x62   : > { %s1729_s27 = sadd.s32 1, %s1237_s20  ;;  %s1521_s15 = scalar_lea.sflag [#allocation6], %s239_s11 }
  0x63   : > { %s1519_s21 = scalar_select %p168_p5, %s1237_s20, %s1729_s27  }
  0x64   : > { %s1109_s13 = scalar_lea.hbm %s1512_s6, 1024  ;;  %p1111_p13 = pneg %p1424_p7 }
  0x65   : > { %p1110_p11 = scmp.ne.s32.totalorder %s1512_s6, %s1109_s13  ;;  %s1114_s0 = scalar_lea.hbm %s1695_s3, 3072 }
  0x66   : > { %p1115_p8 = scmp.lt.u32.totalorder %s1512_s6, %s1695_s3  ;;  %p1116_p4 = scmp.lt.u32.totalorder %s1114_s0, %s1109_s13 }
  0x67   : > { %p1112_p1 = pnand %p1111_p13, %p1110_p11  ;;  %p1118_p6 = scmp.lt.u32.totalorder %s1109_s13, %s1512_s6 }
  0x68   : > { %p1117_p3 = por %p1116_p4, %p1115_p8 }
  0x69   : > { %p1113_p2 = pneg %p1112_p1 }
  0x6a   : > { %p1119_p9 = por %p1118_p6, %p1117_p3 }
  0x6c   : > { %p1120_p10 = pnand %p1119_p9, %p1113_p2 }
  0x6e   : > { %1123 = shalt.err (!%p1120_p10)
}
  0x6f   : > { %s1124_s27 = scalar_lea.vmem %s1514_s1, 1024  ;;  %s1275_s11 = smov [#allocation10]  }
  0x70   : > { %p1125_p12 = scmp.ne.s32.totalorder %s1514_s1, %s1124_s27  ;;  %s1129_s2 = sshll.u32 %s1275_s11, 4  ;;  %s1130_s2 = int_to_ptr.vmem [resolvable:$false] %s1129_s2 }
  0x71   : > { %s1131_s5 = scalar_lea.vmem %s1130_s2, 2048  ;;  %p1132_p1 = scmp.lt.s32.totalorder %s1514_s1, %s1130_s2 }
  0x72   : > { %p1127_p5 = pnand %p1125_p12, %p1111_p13  ;;  %p1133_p8 = scmp.lt.s32.totalorder %s1131_s5, %s1124_s27 }
  0x74   : > { %p1128_p11 = pneg %p1127_p5  ;;  %p1134_p4 = por %p1133_p8, %p1132_p1 }
  0x76   : > { %p1135_p3 = pnand %p1134_p4, %p1128_p11 }
  0x78   : > { %1138 = shalt.err (!%p1135_p3)
}
  0x79   : > { %s1276_s30 = smov 192   ;;  %s1730_s13 = smov 4  }
  0x7a   : > { %s1731_s18 = smov 64   ;;  %267 = sbr.rel (%p1407_p0) target bundleno = 1262 (0x4ee), region = 40 }
  0x7b   : > { %907 = dma.hbm_to_vmem [thread:$0]  (!%p1424_p7), %s1512_s6, 1024, %s1514_s1, %s1521_s15, %s1276_s30, %s1731_s18, %s1730_s13  }
  0x7c   : > { %p1732_p13 = scmp.eq.s32.totalorder (!%p1407_p0), %s1372_s29, 0 }
  0x81   : > { %1212 = dma.done.wait (%p1732_p13), [#allocation6], 128   ;;  %p1733_p2 = pmov %p1732_p13 }
  0x83   : > { %1214 = vsyncadd (%p1733_p2), [#allocation6], 4294967168  ;;  %p1734_p6 = pmov %p1733_p2 }
  0x84   : > { %p1735_p9 = pmov %p1733_p2 }
  0x85   : > { %1216 = dma.done.wait (%p1734_p6), [#allocation9], 1024  }
  0x86   : > { %1218 = vsyncadd (%p1735_p9), [#allocation9], 4294966272  ;;  %s277_s16 = sand.u32 1, %s1372_s29   ;;  %s279_s1 = sand.u32 1, %s1245_s22  }
  0x87   : > { %s799_s6 = sshll.u32 %s279_s1, 6  ;;  %s278_s12 = scalar_lea.sflag [#allocation6], %s277_s16 }
  0x88   : > { %s1563_s15 = scalar_lea.vmem [#allocation10], %s799_s6  ;;  %p1736_p0 = scmp.ne.s32.totalorder %s1717_s9, 0 }
  0x8a   : > { %1220 = dma.done.wait (%p1736_p0), %s278_s12, 1024  }
  0x8b   : > { %1222 = vsyncadd (%p1736_p0), %s278_s12, 4294966272  ;;  %s308_s7 = sand.u32 1, %s1233_s19   ;;  %p312_p7 = scmp.lt.s32.totalorder %s1253_s24, 2 }
  0x8c   : > { %s800_s29 = sshll.u32 %s308_s7, 4  ;;  %p318_p10 = scmp.eq.s32.totalorder %s1257_s25, 0 }
  0x8d   : > { %p319_p12 = scmp.eq.s32.totalorder %s1253_s24, 0  ;;  %s1582_s27 = scalar_lea.vmem [#allocation11], %s800_s29 }
  0x8e   : > { %s1576_s0 = scalar_select %p312_p7, %s1253_s24, 2 }
  0x8f   : > { %p320_p5 = pnand %p319_p12, %p318_p10 }
  0x90   : > { %s314_s9 = scalar_lea.vmem %s1696_s4, %s1576_s0  ;;  %vm448_vm0 = vcmask (!%p320_p5), 7168   ;;  %v1277_v0 = vmov (!%p320_p5), 0.0   ;;  %v1278_v1 = vmov (!%p320_p5), -1e+30   ;;  %v1021_v2 = vld [vmem:[#allocation8] sm:$0xff] (!%p320_p5)   ;;  %vm1279_vm1 = vmmov (!%p320_p5), 0  }
  0x91   : > { %323 = sbr.rel (%p320_p5) target bundleno = 396 (0x18c), region = 56  ;;  %845 = vmatprep.subr.bf16.mxu0 (!%p320_p5), %v1277_v0  ;;  %449 = vst.msk [vmem:[#allocation3] sm:$0xff] (!%p320_p5), %vm448_vm0, %v1278_v1  ;;  %450 = vst.msk [vmem:[#allocation3 + $0x8] sm:$0xff] (!%p320_p5), %vm448_vm0, %v1278_v1  ;;  %861 = vmatprep.mubr.msk.bf16.mxu0 (!%p320_p5), %vm1279_vm1, %v1277_v0  ;;  %v1022_v3 = vld [vmem:[#allocation8 + $0x8] sm:$0xff] (!%p320_p5)   ;;  %v1023_v4 = vld [vmem:[#allocation8 + $0x10] sm:$0xff] (!%p320_p5)   ;;  %s1737_s5 = sld [smem:[#allocation23_spill]] (!%p320_p5) }
  0x92   : > { %451 = vst.msk [vmem:[#allocation4] sm:$0xff] (!%p320_p5), %vm448_vm0, %v1277_v0  ;;  %452 = vst.msk [vmem:[#allocation4 + $0x8] sm:$0xff] (!%p320_p5), %vm448_vm0, %v1277_v0  ;;  %846 = vmatpush3.bf16.msra.mxu0 (!%p320_p5), %v1021_v2  ;;  %v1024_v5 = vld [vmem:[#allocation8 + $0x18] sm:$0xff] (!%p320_p5)   ;;  %v1025_v6 = vld [vmem:[#allocation8 + $0x20] sm:$0xff] (!%p320_p5)  }
  0x93   : > { %847 = vmatprep.subr.bf16.mxu0 (!%p320_p5), %v1277_v0  ;;  %v1026_v7 = vld [vmem:[#allocation8 + $0x28] sm:$0xff] (!%p320_p5)   ;;  %v1027_v8 = vld [vmem:[#allocation8 + $0x30] sm:$0xff] (!%p320_p5)   ;;  %v1028_v9 = vld [vmem:[#allocation8 + $0x38] sm:$0xff] (!%p320_p5)  }
  0x94   : > { %v1029_v10 = vld [vmem:[#allocation5] sm:$0xff] (!%p320_p5)  }
  0x96   : > { %848 = vmatpush3.bf16.msra.mxu0 (!%p320_p5), %v1022_v3 }
  0x97   : > { %849 = vmatprep.subr.bf16.mxu0 (!%p320_p5), %v1277_v0  ;;  %v801_v11 = vld [vmem:[%s1737_s5] ss:$0 sm:$0xff] (!%p320_p5) }
  0x9a   : > { %850 = vmatpush3.bf16.msra.mxu0 %v1023_v4 }
  0x9b   : > { %851 = vmatprep.subr.bf16.mxu0 %v1277_v0 }
  0x9e   : > { %852 = vmatpush3.bf16.msra.mxu0 %v1024_v5 }
  0x9f   : > { %853 = vmatprep.subr.bf16.mxu0 %v1277_v0 }
  0xa2   : > { %854 = vmatpush3.bf16.msra.mxu0 %v1025_v6 }
  0xa3   : > { %855 = vmatprep.subr.bf16.mxu0 %v1277_v0 }
  0xa6   : > { %856 = vmatpush3.bf16.msra.mxu0 %v1026_v7 }
  0xa7   : > { %857 = vmatprep.subr.bf16.mxu0 %v1277_v0 }
  0xaa   : > { %858 = vmatpush3.bf16.msra.mxu0 %v1027_v8 }
  0xab   : > { %859 = vmatprep.subr.bf16.mxu0 %v1277_v0 }
  0xae   : > { %860 = vmatpush3.bf16.msra.mxu0 %v1028_v9 }
  0xb1   : > { %862 = vmatmul.mubr.bf16.vlgmr.msra.gmra.mrb[0].mxu0 %v1029_v10 }
 0x184   : > { %v437_v12 = vpop.f32.mrb[0].mxu0 }
 0x185   : > { %v438_v13 = vadd.f32 %v801_v11, %v437_v12  ;;  %v863_v14 = vpop.f32.mrb[1].mxu0 }
 0x186   : > { %v440_v15 = vpop.f32.mrb[2].mxu0 }
 0x187   : > { %v444_v16 = vmax.f32 %v438_v13, 0.0  ;;  %v441_v17 = vadd.f32 %v801_v11, %v440_v15  ;;  %v864_v18 = vpop.f32.mrb[3].mxu0 }
 0x189   : > { %446 = vst [vmem:[#allocation2] sm:$0xff] %v444_v16  ;;  %v445_v19 = vmax.f32 %v441_v17, 0.0 }
 0x18b   : > { %447 = vst [vmem:[#allocation2 + $0x8] sm:$0xff] %v445_v19 }
 0x18c PF: > { %v1030_v20 = vld [vmem:[%s1563_s15] sm:$0xff]   ;;  %v1280_v21 = vmov 0.0   ;;  %v1031_v22 = vld [vmem:[%s1563_s15 + $0x8] sm:$0xff]   ;;  %vm1281_vm2 = vmmov 0   ;;  %v1032_v23 = vld [vmem:[%s1563_s15 + $0x10] sm:$0xff]   ;;  %v568_v32 = vlaneseq  ;;  %s820_s30 = sshll.u32 %s1253_s24, 7 }
 0x18d   : > { %865 = vmatprep.subr.bf16.mxu0 %v1280_v21  ;;  %881 = vmatprep.mubr.msk.bf16.mxu0 %vm1281_vm2, %v1280_v21  ;;  %v1033_v24 = vld [vmem:[%s1563_s15 + $0x18] sm:$0xff]   ;;  %v1034_v25 = vld [vmem:[%s1563_s15 + $0x20] sm:$0xff]   ;;  %v1035_v26 = vld [vmem:[%s1563_s15 + $0x28] sm:$0xff]   ;;  %v571_v34 = vstv %s820_s30  ;;  %p821_p11 = scmp.ne.s32.totalorder %s1257_s25, 0 }
 0x18e   : > { %866 = vmatpush3.bf16.msra.mxu0 %v1030_v20  ;;  %v1036_v27 = vld [vmem:[%s1563_s15 + $0x30] sm:$0xff]   ;;  %v1037_v28 = vld [vmem:[%s1563_s15 + $0x38] sm:$0xff]   ;;  %v569_v33 = vand.u32 127, %v568_v32  ;;  %v811_v36 = vld [vmem:[%s314_s9] ss:$0 sm:$0xff]  ;;  %v1282_v45 = vmov (!%p821_p11), 0  }
 0x18f   : > { %867 = vmatprep.subr.bf16.mxu0 %v1280_v21  ;;  %1038 = vset.pattern.permute.xlu1 (!%p821_p11), %v1282_v45  ;;  %v579_v46 = vld [vmem:[#allocation3] sm:$0xff] (!%p821_p11)  ;;  %vm619_vm4 = vcmask (!%p821_p11), 7168   ;;  %v580_v49 = vld [vmem:[#allocation3 + $0x8] sm:$0xff] (!%p821_p11)  ;;  %v593_v1 = vld [vmem:[#allocation4] sm:$0xff] (!%p821_p11) }
 0x190   : > { %v453_v29 = vld [vmem:[#allocation2] sm:$0xff]  ;;  %v572_v35 = vadd.s32 %v571_v34, %v569_v33  ;;  %1039 = vset.pattern.permute.xlu0 (!%p821_p11), %v1282_v45  ;;  %v594_v5 = vld [vmem:[#allocation4 + $0x8] sm:$0xff] (!%p821_p11) }
 0x192   : > { %868 = vmatpush3.bf16.msra.mxu0 %v1031_v22  ;;  %v454_v30 = vld [vmem:[#allocation2 + $0x8] sm:$0xff]  ;;  %vm573_vm3 = vcmp.lt.s32.totalorder %v572_v35, 300 }
 0x193   : > { %869 = vmatprep.subr.bf16.mxu0 %v1280_v21  ;;  %v455_v31 = vpack.c.bf16 %v454_v30, %v453_v29 }
 0x196   : > { %870 = vmatpush3.bf16.msra.mxu0 %v1032_v23 }
 0x197   : > { %871 = vmatprep.subr.bf16.mxu0 %v1280_v21 }
 0x19a   : > { %872 = vmatpush3.bf16.msra.mxu0 %v1033_v24 }
 0x19b   : > { %873 = vmatprep.subr.bf16.mxu0 %v1280_v21 }
 0x19e   : > { %874 = vmatpush3.bf16.msra.mxu0 %v1034_v25 }
 0x19f   : > { %875 = vmatprep.subr.bf16.mxu0 %v1280_v21 }
 0x1a2   : > { %876 = vmatpush3.bf16.msra.mxu0 %v1035_v26 }
 0x1a3   : > { %877 = vmatprep.subr.bf16.mxu0 %v1280_v21 }
 0x1a6   : > { %878 = vmatpush3.bf16.msra.mxu0 %v1036_v27 }
 0x1a7   : > { %879 = vmatprep.subr.bf16.mxu0 %v1280_v21 }
 0x1aa   : > { %880 = vmatpush3.bf16.msra.mxu0 %v1037_v28 }
 0x1ad   : > { %882 = vmatmul.mubr.bf16.vlgmr.msra.gmra.mrb[0].mxu0 %v455_v31 }
 0x27f   : > { %578 = sbr.rel (%p821_p11) target bundleno = 1080 (0x438), region = 60 }
 0x280   : > { %v561_v37 = vpop.f32.mrb[0].mxu0 }
 0x281   : > { %v562_v38 = vadd.f32 %v811_v36, %v561_v37  ;;  %v883_v39 = vpop.f32.mrb[1].mxu0 }
 0x282   : > { %v564_v40 = vpop.f32.mrb[2].mxu0 }
 0x283   : > { %v1601_v41 = vsel %vm573_vm3, %v562_v38, -1e+30  ;;  %v565_v42 = vadd.f32 %v811_v36, %v564_v40  ;;  %v884_v43 = vpop.f32.mrb[3].mxu0 }
 0x284   : > { %581 = vmax.xlane.f32.xlu0 (!%p821_p11), %v1601_v41 }
 0x285   : > { %v1603_v44 = vsel %vm573_vm3, %v565_v42, -1e+30 }
 0x288   : > { %583 = vmax.xlane.f32.xlu0 %v1603_v44 }
 0x311   : > { %v582_v47 = vpop.xlane.xlu0 %581 }
 0x312   : > { %v585_v48 = vmax.f32 %v579_v46, %v582_v47 }
 0x314   : > { %v587_v50 = vsub.f32 %v579_v46, %v585_v48  ;;  %622 = vst.msk [vmem:[#allocation3] sm:$0xff] %vm619_vm4, %v585_v48  ;;  %599 = vperm.xlu1 %1038, %v585_v48  }
 0x315   : > { %v584_v51 = vpop.xlane.xlu0 %583 }
 0x316   : > { %v586_v52 = vmax.f32 %v580_v49, %v584_v51  ;;  %v589_v62 = vmul.f32 1.442695, %v587_v50 }
 0x318   : > { %v588_v53 = vsub.f32 %v580_v49, %v586_v52  ;;  %623 = vst.msk [vmem:[#allocation3 + $0x8] sm:$0xff] %vm619_vm4, %v586_v52  ;;  %604 = vperm.xlu1 %1038, %v586_v52  }
 0x31a   : > { %v591_v63 = vmul.f32 1.442695, %v588_v53 }
 0x393   : > { %v600_v54 = vpop.permute.xlu1 %599 }
 0x394   : > { %v607_v55 = vsub.f32 %v1601_v41, %v600_v54 }
 0x396   : > { %v609_v56 = vmul.f32 1.442695, %v607_v55 }
 0x397   : > { %v605_v57 = vpop.permute.xlu1 %604 }
 0x398   : > { %1040 = vpow2.f32 %v609_v56  ;;  %v608_v58 = vsub.f32 %v1603_v44, %v605_v57 }
 0x39a   : > { %v611_v59 = vmul.f32 1.442695, %v608_v58 }
 0x39c   : > { %1042 = vpow2.f32 %v611_v59 }
 0x39d   : > { %1044 = vpow2.f32 %v589_v62 }
 0x39e   : > { %1046 = vpow2.f32 %v591_v63 }
 0x3a2   : > { %v1041_v60 = vpop.eup %1040 }
 0x3a3   : > { %613 = vadd.xlane.f32.xlu0 %v1041_v60 }
 0x3a6   : > { %v1043_v61 = vpop.eup %1042 }
 0x3a7   : > { %615 = vadd.xlane.f32.xlu1 %v1043_v61  ;;  %v1045_v0 = vpop.eup %1044 }
 0x3a8   : > { %v595_v2 = vmul.f32 %v1045_v0, %v593_v1  ;;  %v1047_v3 = vpop.eup %1046 }
 0x3a9   : > { %v596_v7 = vmul.f32 %v1047_v3, %v594_v5 }
 0x430   : > { %v614_v4 = vpop.xlane.xlu0 %613 }
 0x431   : > { %v617_v6 = vadd.f32 %v614_v4, %v595_v2 }
 0x433   : > { %620 = vst.msk [vmem:[#allocation4] sm:$0xff] %vm619_vm4, %v617_v6 }
 0x434   : > { %v616_v8 = vpop.xlane.xlu1 %615 }
 0x435   : > { %v618_v9 = vadd.f32 %v616_v8, %v596_v7 }
 0x437   : > { %621 = vst.msk [vmem:[#allocation4 + $0x8] sm:$0xff] %vm619_vm4, %v618_v9 }
 0x438 PF: > { %p822_p1 = scmp.ne.s32.totalorder %s1257_s25, 1 }
 0x439   : > { %v1283_v11 = vmov (!%p822_p1), 0   ;;  %v628_v14 = vld [vmem:[#allocation3] sm:$0xff] (!%p822_p1)  ;;  %v629_v17 = vld [vmem:[#allocation3 + $0x8] sm:$0xff] (!%p822_p1) }
 0x43a   : > { %627 = sbr.rel (%p822_p1) target bundleno = 1233 (0x4d1), region = 64  ;;  %v630_v10 = vld [vmem:[#allocation4] sm:$0xff] (!%p822_p1)  ;;  %1048 = vset.pattern.permute.xlu0 (!%p822_p1), %v1283_v11 }
 0x43b   : > { %1049 = vlog2.f32 (!%p822_p1), %v630_v10 }
 0x43e   : > { %v631_v12 = vld [vmem:[#allocation4 + $0x8] sm:$0xff] (!%p822_p1) }
 0x43f   : > { %1051 = vlog2.f32 (!%p822_p1), %v631_v12 }
 0x445   : > { %v1050_v13 = vpop.eup %1049 }
 0x446   : > { %v633_v16 = vmul.f32 0.6931472, %v1050_v13 }
 0x448   : > { %v636_v19 = vadd.f32 %v633_v16, %v628_v14 }
 0x449   : > { %v1052_v15 = vpop.eup %1051 }
 0x44a   : > { %v635_v18 = vmul.f32 0.6931472, %v1052_v15  ;;  %640 = vperm.xlu0 %1048, %v636_v19  }
 0x44c   : > { %v637_v20 = vadd.f32 %v635_v18, %v629_v17 }
 0x44e   : > { %645 = vperm.xlu0 %1048, %v637_v20  }
 0x4c9   : > { %v641_v21 = vpop.permute.xlu0 %640 }
 0x4ca   : > { %v648_v22 = vsub.f32 %v1601_v41, %v641_v21 }
 0x4cc   : > { %650 = vst [vmem:[%s1582_s27] sm:$0xff] %v648_v22 }
 0x4cd   : > { %v646_v23 = vpop.permute.xlu0 %645 }
 0x4ce   : > { %v649_v24 = vsub.f32 %v1603_v44, %v646_v23 }
 0x4d0   : > { %651 = vst [vmem:[%s1582_s27 + $0x8] sm:$0xff] %v649_v24 }
 0x4d1 PF: > { %s1738_s16 = sld [smem:[#allocation18_spill]]  ;;  %s660_s1 = smul.u32 %s1253_s24, %s1257_s25 }
 0x4d2   : > { %s669_s6 = sshll.u32 %s1582_s27, 4  ;;  %s1739_s0 = sld [smem:[#allocation24_spill]]  ;;  %s1622_s6 = int_to_ptr.vmem [resolvable:$true] %s669_s6 }
 0x4d3   : > { %s824_s12 = sshll.u32 %s660_s1, 7  ;;  %s1631_s14 = scalar_lea.sflag [#allocation7], %s308_s7 }
 0x4d4   : > { %s1139_s9 = scalar_lea.vmem %s1622_s6, 256  ;;  %s1284_s24 = smov [#allocation11]  }
 0x4d5   : > { %p1140_p8 = scmp.ne.s32.totalorder %s1622_s6, %s1139_s9  ;;  %s1143_s25 = sshll.u32 %s1284_s24, 4  ;;  %s1144_s25 = int_to_ptr.vmem [resolvable:$false] %s1143_s25 }
 0x4d6   : > { %s1145_s27 = scalar_lea.vmem %s1144_s25, 512  ;;  %p1146_p2 = scmp.lt.s32.totalorder %s1622_s6, %s1144_s25 }
 0x4d7   : > { %p1740_p4 = scmp.ne.s32.totalorder %s1738_s16, 0  ;;  %p1147_p6 = scmp.lt.s32.totalorder %s1145_s27, %s1139_s9 }
 0x4d8   : > { %s1627_s8 = scalar_lea.hbm %s1739_s0, %s824_s12 }
 0x4d9   : > { %p1141_p3 = pnand %p1140_p8, %p1740_p4  ;;  %p1148_p9 = por %p1147_p6, %p1146_p2 }
 0x4db   : > { %p1142_p13 = pneg %p1141_p3 }
 0x4dd   : > { %p1149_p0 = pnand %p1148_p9, %p1142_p13 }
 0x4df   : > { %1152 = shalt.err (!%p1149_p0)
}
 0x4e0   : > { %s1153_s7 = scalar_lea.hbm %s1627_s8, 256  ;;  %s1157_s5 = scalar_lea.hbm %s1739_s0, 768 }
 0x4e1   : > { %p1154_p7 = scmp.ne.s32.totalorder %s1627_s8, %s1153_s7  ;;  %p1158_p5 = scmp.lt.u32.totalorder %s1627_s8, %s1739_s0 }
 0x4e2   : > { %p1159_p11 = scmp.lt.u32.totalorder %s1157_s5, %s1153_s7  ;;  %p1161_p8 = scmp.lt.u32.totalorder %s1153_s7, %s1627_s8 }
 0x4e3   : > { %p1155_p10 = pnand %p1154_p7, %p1740_p4 }
 0x4e4   : > { %p1160_p1 = por %p1159_p11, %p1158_p5 }
 0x4e5   : > { %p1156_p12 = pneg %p1155_p10 }
 0x4e6   : > { %p1162_p3 = por %p1161_p8, %p1160_p1 }
 0x4e8   : > { %p1163_p13 = pnand %p1162_p3, %p1156_p12 }
 0x4ea   : > { %1166 = shalt.err (!%p1163_p13)
}
 0x4eb   : > { %s1285_s18 = smov 128   ;;  %s1286_s1 = smov 384  }
 0x4ec   : > { %s1287_s12 = smov 8  }
 0x4ed   : > { %895 = dma.vmem_to_hbm [thread:$0]  (%p1740_p4), %s1622_s6, 256, %s1627_s8, %s1631_s14, %s1285_s18, %s1286_s1, %s1287_s12  }
 0x4ee PF: > { %s1741_s15 = sld [smem:[#allocation16_spill]]  ;;  %s1742_s29 = sld [smem:[#allocation19_spill]] }
 0x4ef   : > { %p917_p2 = scmp.ge.s32.totalorder %s1269_s28, 2 }
 0x4f4   : > { %s684_s9 = sand.u32 1, %s1741_s15   ;;  %p1743_p6 = scmp.ne.s32.totalorder %s1742_s29, 0 }
 0x4f5   : > { %s685_s24 = scalar_lea.sflag [#allocation7], %s684_s9 }
 0x4f6   : > { %p909_p9 = pnand %p917_p2, %p1743_p6 }
 0x4f8   : > { %1224 = dma.done.wait (!%p909_p9), %s685_s24, 256  }
 0x4f9   : > { %1226 = vsyncadd (!%p909_p9), %s685_s24, 4294967040  ;;  %s20_s28 = sadd.s32 1, %s1269_s28   ;;  %s1744_s25 = sld [smem:[#allocation17_spill]] }
 0x4fa   : > { %p17_p0 = scmp.ge.s32.totalorder %s20_s28, 8   ;;  %s1745_s27 = sld [smem:[#allocation20_spill]] }
 0x4fb   : > { %s1746_s18 = smov %s1233_s19  ;;  %s1747_s19 = smov %s1237_s20 }
 0x4fc   : > { %s1748_s20 = smov %s1519_s21  ;;  %s1749_s21 = smov %s1245_s22 }
 0x4fd   : > { %s1750_s22 = smov %s1249_s23  ;;  %s1751_s23 = smov %s1505_s17 }
 0x4fe   : > { %s1752_s24 = smov %s1261_s26  ;;  %s1753_s26 = smov %s1755_s10 }
 0x4ff   :  { %19 = sbr.rel (!%p17_p0) target bundleno = 14 (0xe), region = 108 }
 0x506   :  { %690 = vsyncpa [#allocation6], 1 }
 0x507   :  { %692 = vsyncpa [#allocation6 + $0x1], 1 }
 0x508   :  { %693 = vsyncpa [#allocation9], 1 }
 0x509   :  { %694 = vsyncpa [#allocation7], 1 }
 0x50a   :  { %696 = vsyncpa [#allocation7 + $0x1], 1 }

</bundles_post_ra>
